<compile_context>
chip_gen: v7x
topology: tpu7x:2x2x1
jax: 0.10.0
libtpu: 0.0.40
codegen_flags: <defaults>
</compile_context>

<pallas_src>
import math

import jax
import jax.numpy as jnp
from jax.experimental import pallas as pl
from jax.experimental.pallas import tpu as pltpu


# Per-grid-step working-set target for the double-buffered x + out blocks.
# 6 MiB fits under every generation's default scoped VMEM (v5e 16 MiB,
# v6e/v7x 32 MiB) without needing an explicit vmem_limit_bytes.
_VMEM_STEP_BUDGET = 6 * 1024 * 1024
_MAX_HW_TILE = 32768  # lane-tile cap (review-recommended 16384-32768 range)


def _round_up(x, m):
    return -(-x // m) * m


def _make_tiled_kernel(num_sources, cast_dtype):
    """Tiled path: per-source blocks (C_k, T_HW), output block (Cout, T_HW)."""

    def kernel(*refs):
        x_refs = refs[:num_sources]
        w_refs = refs[num_sources:2 * num_sources]
        b_ref = refs[2 * num_sources]
        o_ref = refs[2 * num_sources + 1]

        def partial_dot(k):
            x = x_refs[k][...]
            if cast_dtype is not None:
                x = x.astype(cast_dtype)  # in-kernel cast: no extra HBM pass
            return jnp.dot(w_refs[k][...], x, preferred_element_type=jnp.float32)

        acc = partial_dot(0)
        for k in range(1, num_sources):
            acc = acc + partial_dot(k)
        o_ref[...] = (acc + b_ref[...]).astype(o_ref.dtype)

    return kernel


def _make_batched_kernel(num_sources, n_batch, cast_dtype):
    """Small-level path: whole level in one block, static loop over batch."""

    def kernel(*refs):
        x_refs = refs[:num_sources]
        w_refs = refs[num_sources:2 * num_sources]
        b_ref = refs[2 * num_sources]
        o_ref = refs[2 * num_sources + 1]
        for n in range(n_batch):
            def partial_dot(k):
                x = x_refs[k][n]
                if cast_dtype is not None:
                    x = x.astype(cast_dtype)
                return jnp.dot(w_refs[k][...], x,
                               preferred_element_type=jnp.float32)

            acc = partial_dot(0)
            for k in range(1, num_sources):
                acc = acc + partial_dot(k)
            o_ref[n] = (acc + b_ref[...]).astype(o_ref.dtype)

    return kernel


def _choose_hw_tile(hw, n_batch, cin_total, cout, in_itemsize, out_itemsize,
                    max_hw_tile):
    """128-multiple lane tile sized from the double-buffered VMEM budget."""
    hw128 = _round_up(hw, 128)
    # bytes per output column of working set: double-buffered x blocks + out.
    per_col = 2 * (cin_total * in_itemsize + cout * out_itemsize)
    t = max(128, (_VMEM_STEP_BUDGET // per_col) // 128 * 128)
    t = min(t, max_hw_tile, hw128)
    # v7x megacore: with batch == 1, keep >=2 grid steps along the HW axis so
    # the "parallel" dimension_semantics can put work on both TensorCores.
    if n_batch == 1 and hw128 >= 256:
        t = min(t, _round_up(-(-hw // 2), 128))
    return t


def conv1x1_multi_source(sources_nchw, weight, bias, *, compute_dtype=None,
                         max_hw_tile=_MAX_HW_TILE):
    """1x1 Conv2d over the channel-concat of `sources_nchw` (all NCHW, same
    N/H/W) WITHOUT materializing the concatenation.  Returns NCHW output."""
    N, _, H, W = sources_nchw[0].shape
    HW = H * W
    Cout = weight.shape[0]
    cins = [int(s.shape[1]) for s in sources_nchw]
    cin_total = sum(cins)
    assert cin_total == weight.shape[1], (cin_total, weight.shape)
    out_dtype = sources_nchw[0].dtype
    in_itemsize = jnp.dtype(out_dtype).itemsize
    out_itemsize = in_itemsize

    # Activations: metadata-only spatial flatten; NO wrapper-side dtype cast
    # (that would be an extra full HBM read+write pass of every source).
    xs = [s.reshape(N, c, HW) for s, c in zip(sources_nchw, cins)]

    # Any narrow-compute cast is applied to the (tiny) weights in the wrapper
    # and to activations inside the kernel, right before the dot.
    cast_dtype = None
    if compute_dtype is not None and jnp.dtype(compute_dtype) != jnp.dtype(out_dtype):
        cast_dtype = jnp.dtype(compute_dtype)
    w_dtype = jnp.dtype(compute_dtype) if compute_dtype is not None else jnp.dtype(out_dtype)

    # Split the (Cout, Cin, 1, 1) weight along Cin to match the source order.
    w2d = weight.reshape(Cout, cin_total).astype(w_dtype)
    ws, off = [], 0
    for c in cins:
        ws.append(w2d[:, off:off + c])
        off += c
    b2d = bias.reshape(Cout, 1).astype(jnp.float32)

    # NOTE: jnp.dot at default precision uses bf16 MXU passes even for f32
    # inputs; pass precision=HIGHEST inside the kernel if strict f32 parity
    # with PyTorch is ever required (kernel is HBM-bound, so it is ~free).

    flops = 2 * N * HW * cin_total * Cout
    bytes_accessed = (N * HW * cin_total * in_itemsize
                      + cin_total * Cout * jnp.dtype(w_dtype).itemsize
                      + Cout * 4
                      + N * HW * Cout * out_itemsize)
    cost = pl.CostEstimate(flops=flops, transcendentals=0,
                           bytes_accessed=bytes_accessed)

    hw128 = _round_up(HW, 128)
    t_hw = _choose_hw_tile(HW, N, cin_total, Cout, in_itemsize, out_itemsize,
                           max_hw_tile)
    n_hw_blocks = pl.cdiv(HW, t_hw)
    batched_bytes = N * hw128 * (cin_total * in_itemsize + Cout * out_itemsize)
    use_batched = (n_hw_blocks == 1) and (batched_bytes <= _VMEM_STEP_BUDGET)

    if use_batched:
        # Tiny level: one kernel invocation for the whole level (whole batch in
        # one block) -- removes per-batch grid-step overhead that dominates the
        # few-KB levels at the bottom of the pyramid.
        x_specs = [pl.BlockSpec((N, c, HW), lambda i: (0, 0, 0)) for c in cins]
        w_specs = [pl.BlockSpec((Cout, c), lambda i: (0, 0)) for c in cins]
        b_spec = pl.BlockSpec((Cout, 1), lambda i: (0, 0))
        out_spec = pl.BlockSpec((N, Cout, HW), lambda i: (0, 0, 0))
        out = pl.pallas_call(
            _make_batched_kernel(len(xs), N, cast_dtype),
            out_shape=jax.ShapeDtypeStruct((N, Cout, HW), out_dtype),
            grid=(1,),
            in_specs=x_specs + w_specs + [b_spec],
            out_specs=out_spec,
            compiler_params=pltpu.CompilerParams(
                dimension_semantics=("arbitrary",)),
            cost_estimate=cost,
        )(*xs, *ws, b2d)
    else:
        # Tiled path: grid over (N, HW tiles); weights/bias stay VMEM-resident
        # (index_map returns (0,0)); both axes independent -> parallel.
        x_specs = [pl.BlockSpec((None, c, t_hw), lambda n, j: (n, 0, j))
                   for c in cins]
        w_specs = [pl.BlockSpec((Cout, c), lambda n, j: (0, 0)) for c in cins]
        b_spec = pl.BlockSpec((Cout, 1), lambda n, j: (0, 0))
        out_spec = pl.BlockSpec((None, Cout, t_hw), lambda n, j: (n, 0, j))
        out = pl.pallas_call(
            _make_tiled_kernel(len(xs), cast_dtype),
            out_shape=jax.ShapeDtypeStruct((N, Cout, HW), out_dtype),
            grid=(N, n_hw_blocks),
            in_specs=x_specs + w_specs + [b_spec],
            out_specs=out_spec,
            compiler_params=pltpu.CompilerParams(
                dimension_semantics=("parallel", "parallel")),
            cost_estimate=cost,
        )(*xs, *ws, b2d)

    return out.reshape(N, Cout, H, W)


def init_skip_compression_params(key, base_channels_int, base_channels_ext,
                                 depth, num_skip):
    """Deterministic init mirroring nn.Conv2d default (uniform +/- 1/sqrt(fan_in))."""
    params = []
    for i in range(depth - 1, -1, -1):
        channels_ext = 2 ** i * base_channels_ext
        channels_int = 2 ** i * base_channels_int
        cin = num_skip * channels_ext + channels_int
        cout = channels_int
        key, kw, kb = jax.random.split(key, 3)
        bound = 1.0 / math.sqrt(cin)
        w = jax.random.uniform(kw, (cout, cin, 1, 1), jnp.float32, -bound, bound)
        b = jax.random.uniform(kb, (cout,), jnp.float32, -bound, bound)
        params.append((w, b))
    return params


def skip_compression_forward(params, skip, *, compute_dtype=None,
                             max_hw_tile=_MAX_HW_TILE):
    """skip: tuple over sources; each source is a tuple over depth levels (NCHW).

    Equivalent to: for each level, torch.cat(sources, dim=1) -> 1x1 Conv2d.
    The channel concat is fused into the kernel via per-source weight slices.
    """
    # TODO(synk): optionally fuse all per-level pallas_calls into one launch to
    # remove per-call dispatch overhead on the tiny deep levels.
    out = []
    for (w, b), level_sources in zip(params, zip(*skip)):
        out.append(conv1x1_multi_source(list(level_sources), w, b,
                                        compute_dtype=compute_dtype,
                                        max_hw_tile=max_hw_tile))
    return tuple(out)


def _reference_forward(params, skip):
    """Pure-JAX reference (no Pallas) for correctness checking."""
    levels = [jnp.concatenate(s, axis=1) for s in zip(*skip)]
    out = []
    for (w, b), s in zip(params, levels):
        y = jnp.einsum('nchw,oc->nohw', s, w.reshape(w.shape[0], w.shape[1]))
        y = y + b[None, :, None, None]
        out.append(y)
    return tuple(out)


if __name__ == "__main__":
    base_channels_int = 4
    base_channels_ext = 2
    depth = 2
    num_skip = 2
    batch = 2

    key = jax.random.PRNGKey(0)
    key, pkey = jax.random.split(key)
    params = init_skip_compression_params(
        pkey, base_channels_int, base_channels_ext, depth, num_skip)

    # Build the skip pyramid: 1 internal source + num_skip external sources.
    # Level index j corresponds to i = depth-1-j (deepest level first).
    spatial = [8, 16]  # level 0 (i=1): 8x8, level 1 (i=0): 16x16
    internal = []
    externals = [[] for _ in range(num_skip)]
    for j in range(depth):
        i = depth - 1 - j
        ch_int = 2 ** i * base_channels_int
        ch_ext = 2 ** i * base_channels_ext
        hw = spatial[j]
        key, k_int = jax.random.split(key)
        internal.append(jax.random.normal(k_int, (batch, ch_int, hw, hw), jnp.float32))
        for n in range(num_skip):
            key, k_ext = jax.random.split(key)
            externals[n].append(
                jax.random.normal(k_ext, (batch, ch_ext, hw, hw), jnp.float32))

    skip = (tuple(internal),) + tuple(tuple(e) for e in externals)

    ref = jax.block_until_ready(_reference_forward(params, skip))

    # 1) f32 path (small levels -> single-block batched kernel) -- tight tol.
    out = jax.block_until_ready(skip_compression_forward(params, skip))
    for o, r in zip(out, ref):
        assert o.shape == r.shape, (o.shape, r.shape)
        assert jnp.allclose(o, r, atol=1e-4, rtol=1e-4), "f32 mismatch vs reference"

    # 2) bf16 compute path (cast happens inside the kernel) -- loose tol.
    out_bf16 = jax.block_until_ready(
        skip_compression_forward(params, skip, compute_dtype=jnp.bfloat16))
    for o, r in zip(out_bf16, ref):
        assert o.shape == r.shape, (o.shape, r.shape)
        assert jnp.allclose(o, r, atol=3e-2, rtol=3e-2), "bf16 mismatch vs reference"

    # 3) Force the tiled (grid) path at small shapes for path coverage.
    out_tiled = jax.block_until_ready(
        skip_compression_forward(params, skip, max_hw_tile=128))
    for o, r in zip(out_tiled, ref):
        assert o.shape == r.shape, (o.shape, r.shape)
        assert jnp.allclose(o, r, atol=1e-4, rtol=1e-4), "tiled-path mismatch"

    # 4) Ragged spatial (HW not a multiple of 128) through the cdiv grid path.
    key, k1, k2, kw2, kb2 = jax.random.split(key, 5)
    s1 = jax.random.normal(k1, (2, 4, 12, 12), jnp.float32)
    s2 = jax.random.normal(k2, (2, 2, 12, 12), jnp.float32)
    w_r = jax.random.uniform(kw2, (4, 6, 1, 1), jnp.float32, -0.4, 0.4)
    b_r = jax.random.uniform(kb2, (4,), jnp.float32, -0.4, 0.4)
    y = jax.block_until_ready(
        conv1x1_multi_source([s1, s2], w_r, b_r, max_hw_tile=128))
    y_ref = (jnp.einsum('nchw,oc->nohw', jnp.concatenate([s1, s2], axis=1),
                        w_r.reshape(4, 6)) + b_r[None, :, None, None])
    assert y.shape == y_ref.shape, (y.shape, y_ref.shape)
    assert jnp.allclose(y, y_ref, atol=1e-4, rtol=1e-4), "ragged-HW mismatch"

    print("KERNEL_OK")
</pallas_src>

<mosaic_0001>
module attributes {stable_mosaic.version = 11 : i64} {
  func.func @kernel(%arg0: i32, %arg1: memref<2x8x64xf32, #tpu.memory_space<vmem>>, %arg2: memref<2x4x64xf32, #tpu.memory_space<vmem>>, %arg3: memref<2x4x64xf32, #tpu.memory_space<vmem>>, %arg4: memref<8x8xf32, #tpu.memory_space<vmem>>, %arg5: memref<8x4xf32, #tpu.memory_space<vmem>>, %arg6: memref<8x4xf32, #tpu.memory_space<vmem>>, %arg7: memref<8x1xf32, #tpu.memory_space<vmem>>, %arg8: memref<2x8x64xf32, #tpu.memory_space<vmem>>) attributes {dimension_semantics = [#tpu.dimension_semantics<arbitrary>], iteration_bounds = array<i64: 1>, scalar_prefetch = 0 : i64, scratch_operands = 0 : i64, tpu.core_type = #tpu.core_type<tc>, window_params = [{pipeline_mode = #tpu.pipeline_mode<synchronous>, transform_indices = @transform_0, window_bounds = array<i64: 2, 8, 64>}, {pipeline_mode = #tpu.pipeline_mode<synchronous>, transform_indices = @transform_1, window_bounds = array<i64: 2, 4, 64>}, {pipeline_mode = #tpu.pipeline_mode<synchronous>, transform_indices = @transform_2, window_bounds = array<i64: 2, 4, 64>}, {pipeline_mode = #tpu.pipeline_mode<synchronous>, transform_indices = @transform_3, window_bounds = array<i64: 8, 8>}, {pipeline_mode = #tpu.pipeline_mode<synchronous>, transform_indices = @transform_4, window_bounds = array<i64: 8, 4>}, {pipeline_mode = #tpu.pipeline_mode<synchronous>, transform_indices = @transform_5, window_bounds = array<i64: 8, 4>}, {pipeline_mode = #tpu.pipeline_mode<synchronous>, transform_indices = @transform_6, window_bounds = array<i64: 8, 1>}, {pipeline_mode = #tpu.pipeline_mode<synchronous>, transform_indices = @transform_7, window_bounds = array<i64: 2, 8, 64>}]} {
    %c0 = arith.constant 0 : index
    %c0_0 = arith.constant 0 : index
    %c0_1 = arith.constant 0 : index
    %0 = vector.load %arg1[%c0, %c0_0, %c0_1] : memref<2x8x64xf32, #tpu.memory_space<vmem>>, vector<1x8x64xf32>
    %1 = vector.shape_cast %0 : vector<1x8x64xf32> to vector<8x64xf32>
    %c0_2 = arith.constant 0 : index
    %c0_3 = arith.constant 0 : index
    %2 = vector.load %arg4[%c0_2, %c0_3] : memref<8x8xf32, #tpu.memory_space<vmem>>, vector<8x8xf32>
    %cst = arith.constant dense<0.000000e+00> : vector<8x64xf32>
    %3 = tpu.matmul %2, %1, %cst {dimension_numbers = #tpu.dot_dimension_numbers<[1], [0], [0], [1], [0, 0, 1, 1], [], []>} : vector<8x8xf32>, vector<8x64xf32>, vector<8x64xf32> -> vector<8x64xf32>
    %c0_4 = arith.constant 0 : index
    %c0_5 = arith.constant 0 : index
    %c0_6 = arith.constant 0 : index
    %4 = vector.load %arg2[%c0_4, %c0_5, %c0_6] : memref<2x4x64xf32, #tpu.memory_space<vmem>>, vector<1x4x64xf32>
    %5 = vector.shape_cast %4 : vector<1x4x64xf32> to vector<4x64xf32>
    %c0_7 = arith.constant 0 : index
    %c0_8 = arith.constant 0 : index
    %6 = vector.load %arg5[%c0_7, %c0_8] : memref<8x4xf32, #tpu.memory_space<vmem>>, vector<8x4xf32>
    %cst_9 = arith.constant dense<0.000000e+00> : vector<8x64xf32>
    %7 = tpu.matmul %6, %5, %cst_9 {dimension_numbers = #tpu.dot_dimension_numbers<[1], [0], [0], [1], [0, 0, 1, 1], [], []>} : vector<8x4xf32>, vector<4x64xf32>, vector<8x64xf32> -> vector<8x64xf32>
    %8 = arith.addf %3, %7 : vector<8x64xf32>
    %c0_10 = arith.constant 0 : index
    %c0_11 = arith.constant 0 : index
    %c0_12 = arith.constant 0 : index
    %9 = vector.load %arg3[%c0_10, %c0_11, %c0_12] : memref<2x4x64xf32, #tpu.memory_space<vmem>>, vector<1x4x64xf32>
    %10 = vector.shape_cast %9 : vector<1x4x64xf32> to vector<4x64xf32>
    %c0_13 = arith.constant 0 : index
    %c0_14 = arith.constant 0 : index
    %11 = vector.load %arg6[%c0_13, %c0_14] : memref<8x4xf32, #tpu.memory_space<vmem>>, vector<8x4xf32>
    %cst_15 = arith.constant dense<0.000000e+00> : vector<8x64xf32>
    %12 = tpu.matmul %11, %10, %cst_15 {dimension_numbers = #tpu.dot_dimension_numbers<[1], [0], [0], [1], [0, 0, 1, 1], [], []>} : vector<8x4xf32>, vector<4x64xf32>, vector<8x64xf32> -> vector<8x64xf32>
    %13 = arith.addf %8, %12 : vector<8x64xf32>
    %c0_16 = arith.constant 0 : index
    %c0_17 = arith.constant 0 : index
    %14 = vector.load %arg7[%c0_16, %c0_17] : memref<8x1xf32, #tpu.memory_space<vmem>>, vector<8x1xf32>
    %15 = vector.broadcast %14 : vector<8x1xf32> to vector<8x64xf32>
    %16 = arith.addf %13, %15 : vector<8x64xf32>
    %c0_18 = arith.constant 0 : index
    %c0_19 = arith.constant 0 : index
    %c0_20 = arith.constant 0 : index
    %17 = vector.load %arg8[%c0_18, %c0_19, %c0_20] : memref<2x8x64xf32, #tpu.memory_space<vmem>>, vector<1x8x64xf32>
    %18 = vector.shape_cast %17 : vector<1x8x64xf32> to vector<8x64xf32>
    %19 = vector.shape_cast %16 : vector<8x64xf32> to vector<1x8x64xf32>
    tpu.vector_store %arg8[%c0_18, %c0_19, %c0_20], %19 {strides = array<i32>} : memref<2x8x64xf32, #tpu.memory_space<vmem>>, vector<1x8x64xf32>,
    %c1 = arith.constant 1 : index
    %c0_21 = arith.constant 0 : index
    %c0_22 = arith.constant 0 : index
    %20 = vector.load %arg1[%c1, %c0_21, %c0_22] : memref<2x8x64xf32, #tpu.memory_space<vmem>>, vector<1x8x64xf32>
    %21 = vector.shape_cast %20 : vector<1x8x64xf32> to vector<8x64xf32>
    %c0_23 = arith.constant 0 : index
    %c0_24 = arith.constant 0 : index
    %22 = vector.load %arg4[%c0_23, %c0_24] : memref<8x8xf32, #tpu.memory_space<vmem>>, vector<8x8xf32>
    %cst_25 = arith.constant dense<0.000000e+00> : vector<8x64xf32>
    %23 = tpu.matmul %22, %21, %cst_25 {dimension_numbers = #tpu.dot_dimension_numbers<[1], [0], [0], [1], [0, 0, 1, 1], [], []>} : vector<8x8xf32>, vector<8x64xf32>, vector<8x64xf32> -> vector<8x64xf32>
    %c1_26 = arith.constant 1 : index
    %c0_27 = arith.constant 0 : index
    %c0_28 = arith.constant 0 : index
    %24 = vector.load %arg2[%c1_26, %c0_27, %c0_28] : memref<2x4x64xf32, #tpu.memory_space<vmem>>, vector<1x4x64xf32>
    %25 = vector.shape_cast %24 : vector<1x4x64xf32> to vector<4x64xf32>
    %c0_29 = arith.constant 0 : index
    %c0_30 = arith.constant 0 : index
    %26 = vector.load %arg5[%c0_29, %c0_30] : memref<8x4xf32, #tpu.memory_space<vmem>>, vector<8x4xf32>
    %cst_31 = arith.constant dense<0.000000e+00> : vector<8x64xf32>
    %27 = tpu.matmul %26, %25, %cst_31 {dimension_numbers = #tpu.dot_dimension_numbers<[1], [0], [0], [1], [0, 0, 1, 1], [], []>} : vector<8x4xf32>, vector<4x64xf32>, vector<8x64xf32> -> vector<8x64xf32>
    %28 = arith.addf %23, %27 : vector<8x64xf32>
    %c1_32 = arith.constant 1 : index
    %c0_33 = arith.constant 0 : index
    %c0_34 = arith.constant 0 : index
    %29 = vector.load %arg3[%c1_32, %c0_33, %c0_34] : memref<2x4x64xf32, #tpu.memory_space<vmem>>, vector<1x4x64xf32>
    %30 = vector.shape_cast %29 : vector<1x4x64xf32> to vector<4x64xf32>
    %c0_35 = arith.constant 0 : index
    %c0_36 = arith.constant 0 : index
    %31 = vector.load %arg6[%c0_35, %c0_36] : memref<8x4xf32, #tpu.memory_space<vmem>>, vector<8x4xf32>
    %cst_37 = arith.constant dense<0.000000e+00> : vector<8x64xf32>
    %32 = tpu.matmul %31, %30, %cst_37 {dimension_numbers = #tpu.dot_dimension_numbers<[1], [0], [0], [1], [0, 0, 1, 1], [], []>} : vector<8x4xf32>, vector<4x64xf32>, vector<8x64xf32> -> vector<8x64xf32>
    %33 = arith.addf %28, %32 : vector<8x64xf32>
    %c0_38 = arith.constant 0 : index
    %c0_39 = arith.constant 0 : index
    %34 = vector.load %arg7[%c0_38, %c0_39] : memref<8x1xf32, #tpu.memory_space<vmem>>, vector<8x1xf32>
    %35 = vector.broadcast %34 : vector<8x1xf32> to vector<8x64xf32>
    %36 = arith.addf %33, %35 : vector<8x64xf32>
    %c1_40 = arith.constant 1 : index
    %c0_41 = arith.constant 0 : index
    %c0_42 = arith.constant 0 : index
    %37 = vector.load %arg8[%c1_40, %c0_41, %c0_42] : memref<2x8x64xf32, #tpu.memory_space<vmem>>, vector<1x8x64xf32>
    %38 = vector.shape_cast %37 : vector<1x8x64xf32> to vector<8x64xf32>
    %39 = vector.shape_cast %36 : vector<8x64xf32> to vector<1x8x64xf32>
    tpu.vector_store %arg8[%c1_40, %c0_41, %c0_42], %39 {strides = array<i32>} : memref<2x8x64xf32, #tpu.memory_space<vmem>>, vector<1x8x64xf32>,
    return
  }
  func.func @transform_0(%arg0: i32) -> (i32, i32, i32) {
    %c0_i32 = arith.constant 0 : i32
    %c0_i32_0 = arith.constant 0 : i32
    %c0_i32_1 = arith.constant 0 : i32
    %c0_i32_2 = arith.constant 0 : i32
    return %c0_i32, %c0_i32_0, %c0_i32_1 : i32, i32, i32
  }
  func.func @transform_1(%arg0: i32) -> (i32, i32, i32) {
    %c0_i32 = arith.constant 0 : i32
    %c0_i32_0 = arith.constant 0 : i32
    %c0_i32_1 = arith.constant 0 : i32
    %c0_i32_2 = arith.constant 0 : i32
    return %c0_i32, %c0_i32_0, %c0_i32_1 : i32, i32, i32
  }
  func.func @transform_2(%arg0: i32) -> (i32, i32, i32) {
    %c0_i32 = arith.constant 0 : i32
    %c0_i32_0 = arith.constant 0 : i32
    %c0_i32_1 = arith.constant 0 : i32
    %c0_i32_2 = arith.constant 0 : i32
    return %c0_i32, %c0_i32_0, %c0_i32_1 : i32, i32, i32
  }
  func.func @transform_3(%arg0: i32) -> (i32, i32) {
    %c0_i32 = arith.constant 0 : i32
    %c0_i32_0 = arith.constant 0 : i32
    %c0_i32_1 = arith.constant 0 : i32
    return %c0_i32, %c0_i32_0 : i32, i32
  }
  func.func @transform_4(%arg0: i32) -> (i32, i32) {
    %c0_i32 = arith.constant 0 : i32
    %c0_i32_0 = arith.constant 0 : i32
    %c0_i32_1 = arith.constant 0 : i32
    return %c0_i32, %c0_i32_0 : i32, i32
  }
  func.func @transform_5(%arg0: i32) -> (i32, i32) {
    %c0_i32 = arith.constant 0 : i32
    %c0_i32_0 = arith.constant 0 : i32
    %c0_i32_1 = arith.constant 0 : i32
    return %c0_i32, %c0_i32_0 : i32, i32
  }
  func.func @transform_6(%arg0: i32) -> (i32, i32) {
    %c0_i32 = arith.constant 0 : i32
    %c0_i32_0 = arith.constant 0 : i32
    %c0_i32_1 = arith.constant 0 : i32
    return %c0_i32, %c0_i32_0 : i32, i32
  }
  func.func @transform_7(%arg0: i32) -> (i32, i32, i32) {
    %c0_i32 = arith.constant 0 : i32
    %c0_i32_0 = arith.constant 0 : i32
    %c0_i32_1 = arith.constant 0 : i32
    %c0_i32_2 = arith.constant 0 : i32
    return %c0_i32, %c0_i32_0, %c0_i32_1 : i32, i32, i32
  }
}

</mosaic_0001>

<bundles_post_ra>
// kernel: tpu_custom_call.1
= control target key start
LH: loop header
LB: loop body
LE: loop exit
PB: predicated region body
PF: predicated region fallthrough
CT: control target
= control target key end

     0   :  { %vm35_vm0 = vcmask 1043456   ;;  %v617_v2 = vmov 0.0   ;;  %vm618_vm1 = vmmov 0   ;;  %vm31_vm2 = vcmask 31744   ;;  %s723_s0 = inlined_call_operand.vmem [shape: f32[2,8,64], index: 0, kind: input, shape index: {}]   ;;  %s724_s1 = inlined_call_operand.vmem [shape: f32[2,4,64], index: 1, kind: input, shape index: {}]   ;;  %s725_s2 = inlined_call_operand.vmem [shape: f32[2,4,64], index: 2, kind: input, shape index: {}]   ;;  %s726_s3 = inlined_call_operand.vmem [shape: f32[8,8], index: 3, kind: input, shape index: {}]   ;;  %s727_s4 = inlined_call_operand.vmem [shape: f32[8,4], index: 4, kind: input, shape index: {}]   ;;  %s728_s5 = inlined_call_operand.vmem [shape: f32[8,4], index: 5, kind: input, shape index: {}]   ;;  %s729_s6 = inlined_call_operand.vmem [shape: f32[8,1], index: 6, kind: input, shape index: {}]   ;;  %s730_s7 = inlined_call_operand.hbm [shape: f32[2,8,64], index: 7, kind: output, shape index: {}]  }
   0x1   :  { %v29_v0 = vld [vmem:[%s724_s1] sm:$0xf]  ;;  %556 = vmatprep.subr.mxu0 %v617_v2  ;;  %558 = vmatprep.mubr.msk.f32.mxu0 %vm618_vm1, %v617_v2  ;;  %vm109_vm3 = vcmask 64512  }
   0x2   :  { %v30_v1 = vld [vmem:[%s727_s4] sm:$0xff]  ;;  %557 = vmatpush3.msk.msra.mxu0 %vm35_vm0, %v29_v0  ;;  %561 = vmatprep.subr.mxu1 %v617_v2 }
   0x3   :  { %v27_v3 = vld [vmem:[%s723_s0] sm:$0xff]  ;;  %559 = vmatmul.mubr.msk.f32.vlgmr.msra.gmra.mrb[0].mxu0 %vm31_vm2, %v30_v1 }
   0x4   :  { %v28_v4 = vld [vmem:[%s726_s3] sm:$0xff]  ;;  %562 = vmatpush3.msra.mxu1 %v27_v3 }
   0x5   :  { %v183_v5 = vld [vmem:[%s725_s2] sm:$0xf] }
   0x6   :  { %12 = vsyncpa [#allocation3], 0  ;;  %563 = vmatprep.mubr.msk.f32.mxu1 %vm618_vm1, %v617_v2  ;;  %566 = vmatprep.subr.mxu0 %v617_v2  ;;  %v537_v6 = vld [vmem:[%s724_s1 + $0x4] sm:$0xf]  ;;  %v536_v8 = vld [vmem:[%s723_s0 + $0x8] sm:$0xff]  ;;  %v619_v11 = vmov 0  }
   0x7   :  { %v184_v7 = vld [vmem:[%s728_s5] sm:$0xff]  ;;  %564 = vmatmul.mubr.msk.f32.vlgmr.msra.gmra.mrb[0].mxu1 %vm109_vm3, %v28_v4  ;;  %567 = vmatpush3.msk.msra.mxu0 %vm35_vm0, %v183_v5  ;;  %vm269_vm4 = vcmask 523264   ;;  %s620_s0 = smov [#allocation2]  }
   0x8   :  { %571 = vmatprep.subr.mxu1 %v617_v2  ;;  %568 = vmatprep.mubr.msk.f32.mxu0 %vm618_vm1, %v617_v2  ;;  %v541_v9 = vld [vmem:[%s725_s2 + $0x4] sm:$0xf]  ;;  %s520_s2 = sshll.u32 %s620_s0, 4  ;;  %s521_s2 = int_to_ptr.vmem [resolvable:$true] %s520_s2 }
   0x9   :  { %572 = vmatpush3.msk.msra.mxu1 %vm35_vm0, %v537_v6  ;;  %569 = vmatmul.mubr.msk.f32.vlgmr.msra.gmra.mrb[2].mxu0 %vm31_vm2, %v184_v7  ;;  %v262_v10 = vld [vmem:[%s729_s6] sm:$0xff]  ;;  %s593_s6 = scalar_lea.vmem %s521_s2, 256  ;;  %p598_p1 = scmp.lt.s32.totalorder %s521_s2, %s521_s2 }
   0xa   :  { %576 = vmatprep.subr.mxu0 %v617_v2  ;;  %573 = vmatprep.mubr.msk.f32.mxu1 %vm618_vm1, %v617_v2  ;;  %p594_p0 = scmp.ne.s32.totalorder %s521_s2, %s593_s6  ;;  %p599_p2 = scmp.lt.s32.totalorder %s593_s6, %s593_s6 }
   0xb   :  { %577 = vmatpush3.msra.mxu0 %v536_v8  ;;  %574 = vmatmul.mubr.msk.f32.vlgmr.msra.gmra.mrb[2].mxu1 %vm31_vm2, %v30_v1 }
   0xc   :  { %581 = vmatprep.subr.mxu1 %v617_v2  ;;  %578 = vmatprep.mubr.msk.f32.mxu0 %vm618_vm1, %v617_v2  ;;  %p600_p3 = por %p599_p2, %p598_p1 }
   0xd   :  { %582 = vmatpush3.msk.msra.mxu1 %vm35_vm0, %v541_v9  ;;  %579 = vmatmul.mubr.msk.f32.vlgmr.msra.gmra.mrb[4].mxu0 %vm109_vm3, %v28_v4 }
   0xe   :  { %583 = vmatprep.mubr.msk.f32.mxu1 %vm618_vm1, %v617_v2  ;;  %592 = vset.pattern.permute.xlu0 %v619_v11  ;;  %p601_p4 = pnand %p600_p3, %p594_p0 }
   0xf   :  { %584 = vmatmul.mubr.msk.f32.vlgmr.msra.gmra.mrb[4].mxu1 %vm31_vm2, %v184_v7  ;;  %265 = vperm.xlu0 %592, %v262_v10  }
  0x13   :  { %509 = vperm.xlu0 %592, %v262_v10  }
  0x8e   :  { %v266_v20 = vpop.permute.xlu0 %265 }
  0x92   :  { %v510_v30 = vpop.permute.xlu0 %509 }
  0xd6   :  { %v105_v12 = vpop.f32.mrb[0].mxu0 }
  0xd7   :  { %v560_v13 = vpop.f32.mrb[1].mxu0 }
  0xda   :  { %v179_v14 = vpop.f32.mrb[0].mxu1 }
  0xdb   :  { %v180_v15 = vadd.f32 %v179_v14, %v105_v12  ;;  %v565_v16 = vpop.f32.mrb[1].mxu1 }
  0xdc   :  { %v257_v17 = vpop.f32.mrb[2].mxu0 }
  0xdd   :  { %v261_v18 = vadd.f32 %v257_v17, %v180_v15  ;;  %v570_v19 = vpop.f32.mrb[3].mxu0 }
  0xde   :  { %v349_v21 = vpop.f32.mrb[2].mxu1 }
  0xdf   :  { %v268_v22 = vadd.f32 %v266_v20, %v261_v18  ;;  %v575_v23 = vpop.f32.mrb[3].mxu1 }
  0xe0   :  { %v422_v24 = vpop.f32.mrb[4].mxu0 }
  0xe1   :  { %270 = vst.msk [vmem:[#allocation2] sm:$0xff] %vm269_vm4, %v268_v22  ;;  %v423_v25 = vadd.f32 %v422_v24, %v349_v21  ;;  %v580_v26 = vpop.f32.mrb[5].mxu0 }
  0xe2   :  { %v501_v27 = vpop.f32.mrb[4].mxu1 }
  0xe3   :  { %v505_v28 = vadd.f32 %v501_v27, %v423_v25  ;;  %v585_v29 = vpop.f32.mrb[5].mxu1 }
  0xe5   :  { %v512_v31 = vadd.f32 %v510_v30, %v505_v28 }
  0xe7   :  { %514 = vst.msk [vmem:[#allocation2 + $0x8] sm:$0xff] %vm269_vm4, %v512_v31 }
  0xe8   :  { %604 = shalt.err (!%p601_p4)
}
  0xe9   :  { %s605_s19 = scalar_lea.hbm %s730_s7, 256 }
  0xea   :  { %p606_p5 = scmp.ne.s32.totalorder %s730_s7, %s605_s19  ;;  %p609_p6 = scmp.lt.u32.totalorder %s605_s19, %s730_s7 }
  0xec   :  { %p611_p7 = pnand %p609_p6, %p606_p5 }
  0xee   :  { %614 = shalt.err (!%p611_p7)
}
  0xef   :  { %s621_s24 = smov 128   ;;  %s622_s25 = smov 8  }
  0xf0   :  { %526 = dma.vmem_to_hbm [thread:$0]  %s521_s2, 256, %s730_s7, [#allocation3], %s621_s24, %s621_s24, %s622_s25  }
  0xf1   :  { %615 = dma.done.wait [#allocation3], 256  }
  0xf2   :  { %616 = vsyncadd [#allocation3], 4294967040 }
  0xf3   :  { %530 = vsyncpa [#allocation3], 1 }

</bundles_post_ra>
